<compile_context>
chip_gen: v7x
topology: tpu7x:2x2x1
jax: 0.10.0
libtpu: 0.0.40
codegen_flags: <defaults>
</compile_context>

<pallas_src>
import functools

import jax
import jax.numpy as jnp
from jax.experimental import pallas as pl
from jax.experimental.pallas import tpu as pltpu

# Module "hyper-parameters" (from __init__), fixed deterministically in-script.
ALPHA = 1.0
BETA = 1.0
MARGIN = 2.0
_EPS = 1e-6  # torch.pairwise_distance default eps (added to the difference)


def _round_up(x, m):
    return ((x + m - 1) // m) * m


def _vmem_capacity_bytes():
    try:
        return int(pltpu.get_tpu_info().vmem_capacity_bytes)
    except Exception:
        return 64 * 1024 * 1024            # conservative (v7x per-TC VMEM)


def _pick_tile(batch, feat, itemsize):
    """Return (tile_rows, lane_major_y, vmem_limit_bytes).

    Generation-aware: bigger tiles/limit on 128-MiB v5e/v6e, smaller on 64-MiB
    v7x.  The per-row budget covers the double-buffered DMA blocks *and* the f32
    intermediates live in the kernel body, so large tiles do not spill.
    """
    vmem = _vmem_capacity_bytes()
    if vmem >= 96 * 1024 * 1024:           # v5e / v6e (128 MiB physical VMEM)
        budget, vmem_limit = 48 * 1024 * 1024, 64 * 1024 * 1024
    else:                                   # v7x (64 MiB per-TC VMEM)
        budget, vmem_limit = 24 * 1024 * 1024, 32 * 1024 * 1024

    # Peak VMEM bytes per batch row:
    #   2 inputs * 2 pipeline buffers * D * itemsize     (BlockSpec DMA buffers)
    # + ~4 live f32 (row, D) intermediates in the body   (diff, diff^2, widen)
    per_row = 2 * 2 * feat * itemsize + 4 * feat * 4

    # Small batches: one exact tile (block dims == array dims -> no tail, no pad).
    if batch < 256 and batch * per_row <= budget:
        return batch, True, vmem_limit

    max_rows = max(8, budget // per_row)
    if max_rows >= 128:
        # Lane-dense y path: tile rows must be a multiple of 128 so the (1, tb)
        # y block is layout-legal.  Cap the tile so there are >= 2 grid tiles and
        # the "parallel" batch axis can split across v7x's two TensorCores.
        tb = min(max_rows, _round_up(pl.cdiv(batch, 2), 128))
        tb = max(128, (tb // 128) * 128)
        return tb, True, vmem_limit

    # Very large D: VMEM forces < 128 rows per tile; fall back to a sublane-major
    # (tb, 1) y block (its extra traffic is negligible relative to D).
    tb = min(max_rows, max(8, _round_up(pl.cdiv(batch, 2), 8)))
    tb = max(8, (tb // 8) * 8)
    return tb, False, vmem_limit


def _contrastive_loss_kernel(x1_ref, x2_ref, y_ref, psum_ref, *,
                             alpha, beta, margin, batch, tile_b):
    # x1_ref, x2_ref : (TB, D) native dtype in VMEM
    # y_ref          : (1, TB) f32 (lane-dense) or (TB, 1) f32 (large-D fallback)
    # psum_ref       : (1, 1, 1) f32 per-tile partial sum
    i = pl.program_id(0)
    base = i * tile_b
    has_tail = (batch % tile_b) != 0          # static (Python) condition

    # Subtract in the native input dtype (packed VALU for bf16 -> closer to
    # torch's native-dtype pairwise_distance), widen once, add eps.  For f32
    # inputs the astype is a no-op.
    diff = (x1_ref[...] - x2_ref[...]).astype(jnp.float32) + _EPS      # (TB, D)
    sq_sum = jnp.sum(diff * diff, axis=-1, keepdims=True)              # (TB, 1) == dist^2
    dist = jnp.sqrt(sq_sum)
    hinge = jnp.maximum(margin - dist, 0.0)
    hinge2 = hinge * hinge

    if has_tail:
        # Rows past `batch` in the last block read unspecified data; select them
        # to exactly 0 so the partial sum (divisor stays exactly B) is correct.
        row = jax.lax.broadcasted_iota(jnp.int32, sq_sum.shape, 0) + base
        valid = row < batch
        sq_sum = jnp.where(valid, sq_sum, 0.0)
        hinge2 = jnp.where(valid, hinge2, 0.0)

    if y_ref.shape[0] == 1:
        # Lane-dense labels: y is a (1, TB) row.  Combine per-row terms with two
        # tiny (1,TB)@(TB,1) dots -- the MXU slot is idle in this HBM-bound kernel.
        y = y_ref[...]
        if has_tail:
            col = jax.lax.broadcasted_iota(jnp.int32, y.shape, 1) + base
            y = jnp.where(col < batch, y, 0.0)
        part = (alpha * jnp.dot(1.0 - y, sq_sum, preferred_element_type=jnp.float32)
                + beta * jnp.dot(y, hinge2, preferred_element_type=jnp.float32))
    else:
        # Sublane labels: y is (TB, 1) (large-D fallback path).
        y = y_ref[...]
        if has_tail:
            row = jax.lax.broadcasted_iota(jnp.int32, y.shape, 0) + base
            y = jnp.where(row < batch, y, 0.0)
        loss = alpha * (1.0 - y) * sq_sum + beta * y * hinge2
        part = jnp.sum(loss, keepdims=True)                            # (1, 1)

    psum_ref[...] = jnp.reshape(part, (1, 1, 1))


def contrastive_loss(x1, x2, y, *, alpha=ALPHA, beta=BETA, margin=MARGIN):
    """x1, x2: (B, D) float32/bf16; y: (B,) labels. Returns scalar f32 mean loss."""
    B, D = x1.shape
    assert x2.shape == (B, D)
    itemsize = jnp.dtype(x1.dtype).itemsize

    tb, lane_y, vmem_limit = _pick_tile(B, D, itemsize)
    n_tiles = pl.cdiv(B, tb)

    if lane_y:
        # Lane-dense labels: a (1, B) row costs ~32 B/elem of padded HBM instead
        # of the ~512 B/elem a (B, 1) f32 column gets in the tiled layout.
        y_in = jnp.reshape(y, (1, B)).astype(jnp.float32)
        y_spec = pl.BlockSpec((1, tb), lambda i: (0, i))
    else:
        y_in = jnp.reshape(y, (B, 1)).astype(jnp.float32)
        y_spec = pl.BlockSpec((tb, 1), lambda i: (i, 0))

    kernel = functools.partial(
        _contrastive_loss_kernel,
        alpha=float(alpha), beta=float(beta), margin=float(margin),
        batch=B, tile_b=tb)

    cost = pl.CostEstimate(
        flops=int(4 * B * D + 16 * B),
        transcendentals=int(B),
        bytes_accessed=int(2 * B * D * itemsize + B * 4 + n_tiles * 4))

    partial_sums = pl.pallas_call(
        kernel,
        out_shape=jax.ShapeDtypeStruct((n_tiles, 1, 1), jnp.float32),
        grid=(n_tiles,),
        in_specs=[
            pl.BlockSpec((tb, D), lambda i: (i, 0)),   # x1 tile (native dtype)
            pl.BlockSpec((tb, D), lambda i: (i, 0)),   # x2 tile (native dtype)
            y_spec,                                    # labels
        ],
        out_specs=pl.BlockSpec((1, 1, 1), lambda i: (i, 0, 0)),
        compiler_params=pltpu.CompilerParams(
            dimension_semantics=("parallel",),         # lets v7x megacore split tiles
            vmem_limit_bytes=vmem_limit),
        cost_estimate=cost,
    )(x1, x2, y_in)

    # Final reduction + mean in the wrapper (f32 over per-tile partial sums).
    return (jnp.sum(partial_sums) / jnp.float32(B)).astype(jnp.float32)


def _reference(x1, x2, y, alpha=ALPHA, beta=BETA, margin=MARGIN):
    x1 = x1.astype(jnp.float32)
    x2 = x2.astype(jnp.float32)
    diff = x1 - x2 + _EPS
    dist = jnp.sqrt(jnp.sum(diff * diff, axis=-1))
    loss = alpha * (1 - y) * dist ** 2 + beta * y * jnp.maximum(0.0, margin - dist) ** 2
    return jnp.mean(loss).astype(jnp.float32)


if __name__ == "__main__":
    keys = jax.random.split(jax.random.PRNGKey(0), 9)

    # Small embedding-pair shapes implied by the forward pass.
    cases = [
        (8, 32),    # single exact tile
        (13, 32),   # single exact tile, batch not a multiple of 8
        (300, 32),  # multi-tile (tb=256): tail masking + lane-dense y + dot combine
    ]
    for idx, (B, D) in enumerate(cases):
        k1, k2, k3 = keys[3 * idx], keys[3 * idx + 1], keys[3 * idx + 2]
        x1 = jax.random.normal(k1, (B, D), dtype=jnp.float32)
        x2 = jax.random.normal(k2, (B, D), dtype=jnp.float32)
        y = jax.random.bernoulli(k3, 0.5, (B,)).astype(jnp.float32)

        out = jax.block_until_ready(contrastive_loss(x1, x2, y))
        ref = _reference(x1, x2, y)
        assert jnp.allclose(out, ref, rtol=1e-5, atol=1e-4), (B, D, out, ref)

    print("KERNEL_OK")
</pallas_src>

<mosaic_0001>
module attributes {stable_mosaic.version = 11 : i64} {
  func.func @_contrastive_loss_kernel(%arg0: i32, %arg1: memref<8x32xf32, #tpu.memory_space<vmem>>, %arg2: memref<8x32xf32, #tpu.memory_space<vmem>>, %arg3: memref<1x8xf32, #tpu.memory_space<vmem>>, %arg4: memref<1x1x1xf32, #tpu.memory_space<vmem>>) attributes {dimension_semantics = [#tpu.dimension_semantics<parallel>], iteration_bounds = array<i64: 1>, scalar_prefetch = 0 : i64, scratch_operands = 0 : i64, tpu.core_type = #tpu.core_type<tc>, window_params = [{transform_indices = @transform_0, window_bounds = array<i64: 8, 32>}, {transform_indices = @transform_1, window_bounds = array<i64: 8, 32>}, {transform_indices = @transform_2, window_bounds = array<i64: 1, 8>}, {transform_indices = @transform_3, window_bounds = array<i64: 1, 1, 1>}]} {
    %c0 = arith.constant 0 : index
    %c0_0 = arith.constant 0 : index
    %0 = vector.load %arg1[%c0, %c0_0] : memref<8x32xf32, #tpu.memory_space<vmem>>, vector<8x32xf32>
    %c0_1 = arith.constant 0 : index
    %c0_2 = arith.constant 0 : index
    %1 = vector.load %arg2[%c0_1, %c0_2] : memref<8x32xf32, #tpu.memory_space<vmem>>, vector<8x32xf32>
    %2 = arith.subf %0, %1 : vector<8x32xf32>
    %cst = arith.constant 9.99999997E-7 : f32
    %3 = vector.broadcast %cst : f32 to vector<8x32xf32>
    %4 = arith.addf %2, %3 : vector<8x32xf32>
    %5 = arith.mulf %4, %4 : vector<8x32xf32>
    %cst_3 = arith.constant dense<0.000000e+00> : vector<8xf32>
    %6 = vector.multi_reduction <add>, %5, %cst_3 [1] : vector<8x32xf32> to vector<8xf32>
    %7 = vector.shape_cast %6 : vector<8xf32> to vector<8x1xf32>
    %8 = math.sqrt %7 : vector<8x1xf32>
    %cst_4 = arith.constant 2.000000e+00 : f32
    %9 = vector.broadcast %cst_4 : f32 to vector<8x1xf32>
    %10 = arith.subf %9, %8 : vector<8x1xf32>
    %cst_5 = arith.constant 0.000000e+00 : f32
    %11 = vector.broadcast %cst_5 : f32 to vector<8x1xf32>
    %12 = arith.maximumf %10, %11 : vector<8x1xf32>
    %13 = arith.mulf %12, %12 : vector<8x1xf32>
    %c0_6 = arith.constant 0 : index
    %c0_7 = arith.constant 0 : index
    %14 = vector.load %arg3[%c0_6, %c0_7] : memref<1x8xf32, #tpu.memory_space<vmem>>, vector<1x8xf32>
    %cst_8 = arith.constant 1.000000e+00 : f32
    %15 = vector.broadcast %cst_8 : f32 to vector<1x8xf32>
    %16 = arith.subf %15, %14 : vector<1x8xf32>
    %cst_9 = arith.constant dense<0.000000e+00> : vector<1x1xf32>
    %17 = tpu.matmul %16, %7, %cst_9 {dimension_numbers = #tpu.dot_dimension_numbers<[1], [0], [0], [1], [0, 0, 1, 1], [], []>} : vector<1x8xf32>, vector<8x1xf32>, vector<1x1xf32> -> vector<1x1xf32>
    %cst_10 = arith.constant 1.000000e+00 : f32
    %18 = vector.broadcast %cst_10 : f32 to vector<1x1xf32>
    %19 = arith.mulf %18, %17 : vector<1x1xf32>
    %cst_11 = arith.constant dense<0.000000e+00> : vector<1x1xf32>
    %20 = tpu.matmul %14, %13, %cst_11 {dimension_numbers = #tpu.dot_dimension_numbers<[1], [0], [0], [1], [0, 0, 1, 1], [], []>} : vector<1x8xf32>, vector<8x1xf32>, vector<1x1xf32> -> vector<1x1xf32>
    %cst_12 = arith.constant 1.000000e+00 : f32
    %21 = vector.broadcast %cst_12 : f32 to vector<1x1xf32>
    %22 = arith.mulf %21, %20 : vector<1x1xf32>
    %23 = arith.addf %19, %22 : vector<1x1xf32>
    %24 = vector.shape_cast %23 : vector<1x1xf32> to vector<1x1x1xf32>
    %c0_13 = arith.constant 0 : index
    %c0_14 = arith.constant 0 : index
    %c0_15 = arith.constant 0 : index
    %25 = vector.load %arg4[%c0_13, %c0_14, %c0_15] : memref<1x1x1xf32, #tpu.memory_space<vmem>>, vector<1x1x1xf32>
    tpu.vector_store %arg4[%c0_13, %c0_14, %c0_15], %24 {strides = array<i32>} : memref<1x1x1xf32, #tpu.memory_space<vmem>>, vector<1x1x1xf32>,
    return
  }
  func.func @transform_0(%arg0: i32) -> (i32, i32) {
    %c0_i32 = arith.constant 0 : i32
    %c0_i32_0 = arith.constant 0 : i32
    return %arg0, %c0_i32 : i32, i32
  }
  func.func @transform_1(%arg0: i32) -> (i32, i32) {
    %c0_i32 = arith.constant 0 : i32
    %c0_i32_0 = arith.constant 0 : i32
    return %arg0, %c0_i32 : i32, i32
  }
  func.func @transform_2(%arg0: i32) -> (i32, i32) {
    %c0_i32 = arith.constant 0 : i32
    %c0_i32_0 = arith.constant 0 : i32
    return %c0_i32, %arg0 : i32, i32
  }
  func.func @transform_3(%arg0: i32) -> (i32, i32, i32) {
    %c0_i32 = arith.constant 0 : i32
    %c0_i32_0 = arith.constant 0 : i32
    %c0_i32_1 = arith.constant 0 : i32
    return %arg0, %c0_i32, %c0_i32_0 : i32, i32, i32
  }
}

</mosaic_0001>

<bundles_post_ra>
// kernel: tpu_custom_call.1
= control target key start
LH: loop header
LB: loop body
LE: loop exit
PB: predicated region body
PF: predicated region fallthrough
CT: control target
= control target key end

     0   :  { %8 = vsyncpa [#allocation3], 0  ;;  %s387_s0 = inlined_call_operand.hbm [shape: f32[8,32], index: 0, kind: input, shape index: {}]   ;;  %s388_s1 = inlined_call_operand.hbm [shape: f32[8,32], index: 1, kind: input, shape index: {}]   ;;  %s389_s2 = inlined_call_operand.vmem [shape: f32[1,8], index: 2, kind: input, shape index: {}]   ;;  %s390_s3 = inlined_call_operand.hbm [shape: f32[1,1,1], index: 3, kind: output, shape index: {}]  }
   0x1   :  { %9 = vsyncpa [#allocation6], 0 }
   0x2   :  { %10 = vsyncpa [#allocation4], 0  ;;  %s321_s12 = smov [#allocation2]   ;;  %s322_s14 = smov [#allocation5]  }
   0x3   :  { %s17_s13 = sshll.u32 %s321_s12, 4  ;;  %s27_s15 = sshll.u32 %s322_s14, 4  ;;  %s18_s13 = int_to_ptr.vmem [resolvable:$true] %s17_s13  ;;  %s28_s15 = int_to_ptr.vmem [resolvable:$true] %s27_s15 }
   0x4   :  { %s249_s18 = scalar_lea.hbm %s387_s0, 128 }
   0x5   :  { %p250_p0 = scmp.ne.s32.totalorder %s387_s0, %s249_s18  ;;  %p253_p1 = scmp.lt.u32.totalorder %s249_s18, %s387_s0 }
   0x7   :  { %p255_p2 = pnand %p253_p1, %p250_p0 }
   0x9   :  { %258 = shalt.err (!%p255_p2)
}
   0xa   :  { %s259_s23 = scalar_lea.vmem %s18_s13, 128  ;;  %p264_p4 = scmp.lt.s32.totalorder %s18_s13, %s18_s13 }
   0xb   :  { %p260_p3 = scmp.ne.s32.totalorder %s18_s13, %s259_s23  ;;  %p265_p5 = scmp.lt.s32.totalorder %s259_s23, %s259_s23 }
   0xd   :  { %p266_p6 = por %p265_p5, %p264_p4 }
   0xf   :  { %p267_p7 = pnand %p266_p6, %p260_p3 }
  0x11   :  { %270 = shalt.err (!%p267_p7)
}
  0x12   :  { %20 = dma.hbm_to_vmem [thread:$0]  %s387_s0, 128, %s18_s13, [#allocation3]  }
  0x13   :  { %s271_s28 = scalar_lea.hbm %s388_s1, 128 }
  0x14   :  { %p272_p8 = scmp.ne.s32.totalorder %s388_s1, %s271_s28  ;;  %p275_p9 = scmp.lt.u32.totalorder %s271_s28, %s388_s1 }
  0x16   :  { %p277_p10 = pnand %p275_p9, %p272_p8 }
  0x18   :  { %280 = shalt.err (!%p277_p10)
}
  0x19   :  { %s281_s6 = scalar_lea.vmem %s28_s15, 128  ;;  %p286_p12 = scmp.lt.s32.totalorder %s28_s15, %s28_s15 }
  0x1a   :  { %p282_p11 = scmp.ne.s32.totalorder %s28_s15, %s281_s6  ;;  %p287_p13 = scmp.lt.s32.totalorder %s281_s6, %s281_s6 }
  0x1c   :  { %p288_p0 = por %p287_p13, %p286_p12 }
  0x1e   :  { %p289_p1 = pnand %p288_p0, %p282_p11 }
  0x20   :  { %292 = shalt.err (!%p289_p1)
}
  0x21   :  { %30 = dma.hbm_to_vmem [thread:$0]  %s388_s1, 128, %s28_s15, [#allocation6]  }
  0x22   :  { %315 = dma.done.wait [#allocation3], 128  }
  0x23   :  { %316 = vsyncadd [#allocation3], 4294967168 }
  0x24   :  { %317 = dma.done.wait [#allocation6], 128  }
  0x25   :  { %318 = vsyncadd [#allocation6], 4294967168  ;;  %v39_v0 = vld [vmem:[#allocation2] sm:$0xff]  ;;  %v40_v1 = vld [vmem:[#allocation5] sm:$0xff]  ;;  %vm44_vm0 = vcmask 261120   ;;  %v323_v6 = vmov 0.0  }
  0x26   :  { %v41_v2 = vsub.f32 %v39_v0, %v40_v1  ;;  %236 = vmatprep.subr.mxu0 %v323_v6  ;;  %231 = vmatprep.subr.mxu1 %v323_v6  ;;  %vm324_vm1 = vmmov 0   ;;  %v58_v7 = vld [vmem:[%s389_s2] sm:$0x1]  ;;  %vm60_vm2 = vcmask 64512   ;;  %s325_s2 = smov [#allocation7]   ;;  %vm207_vm5 = vcmask 0  }
  0x27   :  { %238 = vmatprep.mubr.msk.f32.mxu0 %vm324_vm1, %v323_v6  ;;  %233 = vmatprep.mubr.msk.f32.mxu1 %vm324_vm1, %v323_v6  ;;  %v59_v8 = vsub.f32 1.0, %v58_v7  ;;  %s215_s9 = sshll.u32 %s325_s2, 4  ;;  %s216_s9 = int_to_ptr.vmem [resolvable:$true] %s215_s9 }
  0x28   :  { %v42_v3 = vadd.f32 1e-06, %v41_v2  ;;  %s293_s10 = scalar_lea.vmem %s216_s9, 16  ;;  %s297_s11 = scalar_lea.vmem %s216_s9, 32 }
  0x29   :  { %p294_p2 = scmp.ne.s32.totalorder %s216_s9, %s293_s10  ;;  %p298_p3 = scmp.lt.s32.totalorder %s216_s9, %s216_s9 }
  0x2a   :  { %v43_v4 = vmul.f32 %v42_v3, %v42_v3  ;;  %p299_p4 = scmp.lt.s32.totalorder %s297_s11, %s293_s10 }
  0x2c   :  { %v45_v5 = vsel %vm44_vm0, %v43_v4, 0.0  ;;  %p300_p5 = por %p299_p4, %p298_p3 }
  0x2d   :  { %46 = vadd.xlane.f32.xlu0 %v45_v5 }
  0x2e   :  { %p301_p6 = pnand %p300_p5, %p294_p2 }
  0xba   :  { %v47_v9 = vpop.xlane.xlu0 %46 }
  0xbb   :  { %247 = vrsqrt.f32 %v47_v9  ;;  %237 = vmatpush3.msra.mxu0 %v47_v9  ;;  %vm50_vm3 = vcmp.eq.f32.partialorder %v47_v9, inf  ;;  %v53_v12 = vand.u32 2147483648, %v47_v9  ;;  %vm52_vm4 = vcmp.eq.f32.partialorder %v47_v9, 0.0 }
  0xbc   :  { %239 = vmatmul.mubr.msk.f32.vlgmr.msra.gmra.mrb[0].mxu0 %vm60_vm2, %v59_v8 }
  0xc5   :  { %v248_v10 = vpop.eup %247 }
  0xc6   :  { %v49_v11 = vmul.f32 %v248_v10, %v47_v9 }
  0xc8   :  { %v51_v13 = vsel %vm50_vm3, %v47_v9, %v49_v11 }
  0xc9   :  { %v54_v14 = vsel %vm52_vm4, %v53_v12, %v51_v13 }
  0xca   :  { %v55_v15 = vsub.f32 2.0, %v54_v14 }
  0xcc   :  { %v56_v16 = vmax.f32 %v55_v15, 0.0 }
  0xce   :  { %v57_v17 = vmul.f32 %v56_v16, %v56_v16 }
  0xd0   :  { %232 = vmatpush3.msra.mxu1 %v57_v17 }
  0xd1   :  { %234 = vmatmul.mubr.msk.f32.vlgmr.msra.gmra.mrb[0].mxu1 %vm60_vm2, %v58_v7 }
 0x18f   :  { %v203_v18 = vpop.f32.mrb[0].mxu0 }
 0x190   :  { %v240_v19 = vpop.f32.mrb[1].mxu0 }
 0x1a4   :  { %v130_v20 = vpop.f32.mrb[0].mxu1 }
 0x1a5   :  { %v204_v21 = vadd.f32 %v203_v18, %v130_v20  ;;  %v235_v22 = vpop.f32.mrb[1].mxu1 }
 0x1a7   :  { %208 = vst.msk [vmem:[#allocation7] sm:$0x1] %vm207_vm5, %v204_v21 }
 0x1a8   :  { %304 = shalt.err (!%p301_p6)
}
 0x1a9   :  { %s305_s14 = scalar_lea.hbm %s390_s3, 16 }
 0x1aa   :  { %p306_p7 = scmp.ne.s32.totalorder %s390_s3, %s305_s14  ;;  %p309_p8 = scmp.lt.u32.totalorder %s305_s14, %s390_s3 }
 0x1ac   :  { %p311_p9 = pnand %p309_p8, %p306_p7 }
 0x1ae   :  { %314 = shalt.err (!%p311_p9)
}
 0x1af   :  { %218 = dma.vmem_to_hbm [thread:$0]  %s216_s9, 16, %s390_s3, [#allocation4]  }
 0x1b0   :  { %319 = dma.done.wait [#allocation4], 16  }
 0x1b1   :  { %320 = vsyncadd [#allocation4], 4294967280 }
 0x1b2   :  { %222 = vsyncpa [#allocation3], 1 }
 0x1b3   :  { %223 = vsyncpa [#allocation6], 1 }
 0x1b4   :  { %224 = vsyncpa [#allocation4], 1 }

</bundles_post_ra>
